<compile_context>
chip_gen: v7x
topology: tpu7x:2x2x1
jax: 0.10.0
libtpu: 0.0.40
codegen_flags: <defaults>
</compile_context>

<pallas_src>
import functools

import jax
import jax.numpy as jnp
from jax import lax
from jax.experimental import pallas as pl
from jax.experimental.pallas import tpu as pltpu


# ---------------------------------------------------------------------------
# Helpers
# ---------------------------------------------------------------------------
def _round_up(x, m):
    return ((x + m - 1) // m) * m


def _pad2d(x, rows, cols):
    r, c = x.shape
    if r == rows and c == cols:
        return x
    return jnp.pad(x, ((0, rows - r), (0, cols - c)))


def _vmem_capacity_bytes():
    """Per-core VMEM capacity; conservative (v7x-sized) default if unknown."""
    try:
        info = pltpu.get_tpu_info()
        cap = getattr(info, "vmem_capacity_bytes", None)
        if isinstance(cap, int) and cap > 0:
            return cap
    except Exception:
        pass
    return 64 << 20


def _num_tensorcores():
    """Best-effort TensorCore count per chip; defaults to 1 (safe)."""
    try:
        info = pltpu.get_tpu_info()
        for attr in ("num_cores", "core_count", "num_tensorcores",
                     "tensorcore_count", "cores_per_chip"):
            v = getattr(info, attr, None)
            if isinstance(v, int) and 1 <= v <= 8:
                return v
    except Exception:
        pass
    try:
        kind = jax.devices()[0].device_kind.lower()
        if "v7" in kind:
            return 2
    except Exception:
        pass
    return 1


# ---------------------------------------------------------------------------
# Fused kernel: edge_embeds kept resident in VMEM (no HBM round trip)
# ---------------------------------------------------------------------------
def _fused_hgnn_kernel(adj_ref, emb_ref, out_ref, *scratch, lowp):
    """grid = (nd, 2, nb): (D-slice, phase, node-block).

    phase 0: edge_acc (f32, VMEM-resident) accumulates adj_blk^T @ emb_blk.
    phase 1: out_blk = adj_blk @ edge (bf16 copy of edge_acc when lowp).
    """
    edge_acc_ref = scratch[0]                      # (e_pad, td) f32
    edge_mm_ref = scratch[1] if lowp else scratch[0]

    p = pl.program_id(1)   # phase
    i = pl.program_id(2)   # node-block index
    nb = pl.num_programs(2)

    # --- phase 0: adj_blk^T @ emb_blk, contracting axis 0 of both operands
    # directly on the MXU (no in-kernel XLU transpose).  Init is fused into
    # the first step (direct write) to avoid a full zero-store + reload.
    @pl.when((p == 0) & (i == 0))
    def _():
        edge_acc_ref[...] = lax.dot_general(
            adj_ref[...], emb_ref[...],
            dimension_numbers=(((0,), (0,)), ((), ())),
            preferred_element_type=jnp.float32)

    @pl.when((p == 0) & (i > 0))
    def _():
        edge_acc_ref[...] += lax.dot_general(
            adj_ref[...], emb_ref[...],
            dimension_numbers=(((0,), (0,)), ((), ())),
            preferred_element_type=jnp.float32)

    if lowp:
        # One-time cast of the resident accumulator so phase 1 runs a native
        # bf16 MXU matmul (instead of re-casting per node block).
        @pl.when((p == 0) & (i == nb - 1))
        def _():
            edge_mm_ref[...] = edge_acc_ref[...].astype(edge_mm_ref.dtype)

    # --- phase 1: stream adj again, emit the output node block.
    @pl.when(p == 1)
    def _():
        out_ref[...] = jnp.dot(
            adj_ref[...], edge_mm_ref[...],
            preferred_element_type=jnp.float32).astype(out_ref.dtype)


def _fused_plan(n, e_pad, td, *, in_bytes, budget_bytes):
    """Pick the node-block size tm (128-aligned) so the fused kernel's VMEM
    footprint (double-buffered blocks + resident edge accumulator) fits the
    budget.  Returns (tm, n_pad, need_bytes) or None if it cannot fit."""
    resident = 4 * e_pad * td                       # f32 accumulator
    if in_bytes < 4:
        resident += in_bytes * e_pad * td           # low-precision MXU copy
    n128 = _round_up(n, 128)
    for tm in (2048, 1024, 512, 256, 128):
        tm = min(tm, n128)
        need = (resident
                + 2 * tm * e_pad * in_bytes         # adj block    (x2 buffers)
                + 2 * tm * td * in_bytes            # embeds block (x2 buffers)
                + 2 * tm * td * 4)                  # out block    (x2 buffers)
        if need <= budget_bytes:
            return tm, _round_up(n, tm), need
    return None


def _fused_hgnn(adj_p, emb_p, *, tm, td, nd, vmem_need, vmem_cap, lowp,
                out_dtype):
    n_pad, e_pad = adj_p.shape
    _, d_pad = emb_p.shape
    nb = n_pad // tm
    in_bytes = adj_p.dtype.itemsize

    flops = 4 * n_pad * e_pad * d_pad               # both matmuls
    bytes_accessed = (in_bytes * 2 * nd * n_pad * e_pad   # adj, twice per slice
                      + in_bytes * n_pad * d_pad          # embeds read once
                      + jnp.dtype(out_dtype).itemsize * n_pad * d_pad)

    scratch = [pltpu.VMEM((e_pad, td), jnp.float32)]
    if lowp:
        scratch.append(pltpu.VMEM((e_pad, td), adj_p.dtype))

    vmem_limit = int(max(16 << 20,
                         min(vmem_need + (8 << 20), vmem_cap - (12 << 20))))

    return pl.pallas_call(
        functools.partial(_fused_hgnn_kernel, lowp=lowp),
        out_shape=jax.ShapeDtypeStruct((n_pad, d_pad), out_dtype),
        grid_spec=pltpu.PrefetchScalarGridSpec(
            num_scalar_prefetch=0,
            # (D-slice, phase, node-block).  D-slices are fully independent
            # (own accumulator columns, own output columns) -> "parallel";
            # phase/node carry the accumulator dependence -> "arbitrary".
            grid=(nd, 2, nb),
            in_specs=[
                # adj node-block: same index in both phases of a D-slice.
                pl.BlockSpec((tm, e_pad), lambda dd, p, i: (i, 0)),
                # embeds: consumed in phase 0; pinned to the last-visited
                # block during phase 1 so no redundant DMA is issued.
                pl.BlockSpec((tm, td),
                             lambda dd, p, i: (i * (1 - p) + (nb - 1) * p, dd)),
            ],
            # output only produced in phase 1; the block index is frozen at
            # (0, dd) during phase 0 so nothing is flushed before it is
            # written at (p=1, i=0).
            out_specs=pl.BlockSpec((tm, td), lambda dd, p, i: (i * p, dd)),
            scratch_shapes=scratch,
        ),
        compiler_params=pltpu.CompilerParams(
            dimension_semantics=("parallel", "arbitrary", "arbitrary"),
            vmem_limit_bytes=vmem_limit,
        ),
        cost_estimate=pl.CostEstimate(
            flops=int(flops), transcendentals=0,
            bytes_accessed=int(bytes_accessed)),
    )(adj_p, emb_p)


# ---------------------------------------------------------------------------
# Fallback: two tiled matmul kernels (for very large E*D intermediates)
# ---------------------------------------------------------------------------
def _matmul_kernel(a_ref, b_ref, o_ref, acc_ref):
    """out = A @ B, tiled over (i, j, k); init fused into the k==0 step."""
    k = pl.program_id(2)

    @pl.when(k == 0)
    def _():
        acc_ref[...] = jnp.dot(a_ref[...], b_ref[...],
                               preferred_element_type=jnp.float32)

    @pl.when(k > 0)
    def _():
        acc_ref[...] += jnp.dot(a_ref[...], b_ref[...],
                                preferred_element_type=jnp.float32)

    @pl.when(k == pl.num_programs(2) - 1)
    def _():
        o_ref[...] = acc_ref[...].astype(o_ref.dtype)


def _matmul_at_b_kernel(a_ref, b_ref, o_ref, acc_ref):
    """out = A^T @ B; the transposed contraction is handled by the MXU feed."""
    k = pl.program_id(2)
    dn = (((0,), (0,)), ((), ()))

    @pl.when(k == 0)
    def _():
        acc_ref[...] = lax.dot_general(a_ref[...], b_ref[...],
                                       dimension_numbers=dn,
                                       preferred_element_type=jnp.float32)

    @pl.when(k > 0)
    def _():
        acc_ref[...] += lax.dot_general(a_ref[...], b_ref[...],
                                        dimension_numbers=dn,
                                        preferred_element_type=jnp.float32)

    @pl.when(k == pl.num_programs(2) - 1)
    def _():
        o_ref[...] = acc_ref[...].astype(o_ref.dtype)


def _tiled_matmul(a, b, *, transpose_a, out_dtype, vmem_cap):
    """(A or A^T) @ B with zero-padding to tile multiples."""
    if transpose_a:
        k, m = a.shape
    else:
        m, k = a.shape
    k2, n = b.shape
    assert k == k2

    tm = min(1024, _round_up(m, 128))
    tn = min(1024, _round_up(n, 128))
    tk = min(1024, _round_up(k, 128))
    m_pad, n_pad, k_pad = _round_up(m, tm), _round_up(n, tn), _round_up(k, tk)

    if transpose_a:
        a_p = _pad2d(a, k_pad, m_pad)
        a_spec = pl.BlockSpec((tk, tm), lambda i, j, kk: (kk, i))
        kernel = _matmul_at_b_kernel
    else:
        a_p = _pad2d(a, m_pad, k_pad)
        a_spec = pl.BlockSpec((tm, tk), lambda i, j, kk: (i, kk))
        kernel = _matmul_kernel
    b_p = _pad2d(b, k_pad, n_pad)

    a_bytes = a_p.dtype.itemsize
    b_bytes = b_p.dtype.itemsize
    o_bytes = jnp.dtype(out_dtype).itemsize
    vmem_limit = int(max(16 << 20, min(64 << 20, vmem_cap - (16 << 20))))

    out = pl.pallas_call(
        kernel,
        out_shape=jax.ShapeDtypeStruct((m_pad, n_pad), out_dtype),
        grid_spec=pltpu.PrefetchScalarGridSpec(
            num_scalar_prefetch=0,
            grid=(m_pad // tm, n_pad // tn, k_pad // tk),
            in_specs=[a_spec,
                      pl.BlockSpec((tk, tn), lambda i, j, kk: (kk, j))],
            out_specs=pl.BlockSpec((tm, tn), lambda i, j, kk: (i, j)),
            scratch_shapes=[pltpu.VMEM((tm, tn), jnp.float32)],
        ),
        compiler_params=pltpu.CompilerParams(
            dimension_semantics=("parallel", "parallel", "arbitrary"),
            vmem_limit_bytes=vmem_limit),
        cost_estimate=pl.CostEstimate(
            flops=int(2 * m_pad * n_pad * k_pad), transcendentals=0,
            bytes_accessed=int(a_bytes * m_pad * k_pad
                               + b_bytes * k_pad * n_pad
                               + o_bytes * m_pad * n_pad)),
    )(a_p, b_p)
    return out[:m, :n]


# ---------------------------------------------------------------------------
# Public wrapper
# ---------------------------------------------------------------------------
@functools.partial(jax.jit, static_argnames=("leaky", "bf16_inputs",
                                             "_force_nd", "_force_fallback"))
def hgnn_layer(adj, embeds, leaky=0.5, bf16_inputs=True,
               _force_nd=0, _force_fallback=False):
    """Pallas implementation of HGNNLayer.forward.

    adj:    (N_nodes, N_edges) float32
    embeds: (N_nodes, D)       float32
    returns hyper_embeds: (N_nodes, D) float32

    bf16_inputs=True streams adj/embeds as bfloat16 (f32 accumulation, f32
    output) — the big HBM/MXU win.  Set False for torch.mm-like f32 numerics.
    """
    del leaky  # nn.LeakyReLU is constructed but never applied in forward().
    n, e = adj.shape
    n2, d = embeds.shape
    assert n == n2, "adj and embeds must share the node dimension"

    in_dtype = jnp.bfloat16 if bf16_inputs else adj.dtype
    in_bytes = jnp.dtype(in_dtype).itemsize
    out_dtype = embeds.dtype

    e_pad = _round_up(e, 128)
    d_pad = _round_up(d, 128)

    # Generation-aware VMEM budget: ~96 MiB on 128-MiB v5e/v6e, ~40 MiB on
    # 64-MiB v7x; defaults to the conservative v7x sizing if unknown.
    vmem_cap = _vmem_capacity_bytes()
    budget = max(24 << 20, min(int(0.75 * vmem_cap), vmem_cap - (24 << 20)))

    # Megacore D-split (independent output columns per slice).  Each slice
    # re-streams adj, so only enable it when >=2 TensorCores are detected
    # (v7x) or when forced for testing.
    if _force_nd:
        nd = int(_force_nd)
    elif d_pad >= 256 and _num_tensorcores() >= 2:
        nd = 2
    else:
        nd = 1
    if d_pad % (nd * 128) != 0:
        nd = 1
    td = d_pad // nd

    adj_c = adj.astype(in_dtype)
    emb_c = embeds.astype(in_dtype)

    plan = None
    if not _force_fallback:
        plan = _fused_plan(n, e_pad, td, in_bytes=in_bytes, budget_bytes=budget)

    if plan is not None:
        tm, n_pad, need = plan
        adj_p = _pad2d(adj_c, n_pad, e_pad)
        emb_p = _pad2d(emb_c, n_pad, d_pad)
        out = _fused_hgnn(adj_p, emb_p, tm=tm, td=td, nd=nd, vmem_need=need,
                          vmem_cap=vmem_cap, lowp=bf16_inputs,
                          out_dtype=out_dtype)
        return out[:n, :d]

    # Fallback when the (E, D) intermediate is too big to keep in VMEM:
    # two tiled matmuls; the intermediate stays in the (low-precision) input
    # dtype to halve its HBM round trip when bf16_inputs is set.
    edge_embeds = _tiled_matmul(adj_c, emb_c, transpose_a=True,
                                out_dtype=in_dtype, vmem_cap=vmem_cap)  # (E, D)
    return _tiled_matmul(adj_c, edge_embeds, transpose_a=False,
                         out_dtype=out_dtype, vmem_cap=vmem_cap)        # (N, D)


# ---------------------------------------------------------------------------
# Main
# ---------------------------------------------------------------------------
if __name__ == "__main__":
    key = jax.random.PRNGKey(0)
    k1, k2, k3, k4, k5, k6 = jax.random.split(key, 6)

    def ref_f32(adj, embeds):
        edge = jnp.matmul(adj.T, embeds, precision=lax.Precision.HIGHEST)
        return jnp.matmul(adj, edge, precision=lax.Precision.HIGHEST)

    def ref_bf16(adj, embeds):
        # Mirrors the kernel's precision policy (bf16 inputs, f32 accumulate,
        # bf16 edge operand for the second matmul) to keep tolerances tight.
        a = adj.astype(jnp.bfloat16).astype(jnp.float32)
        x = embeds.astype(jnp.bfloat16).astype(jnp.float32)
        edge = jnp.matmul(a.T, x, precision=lax.Precision.HIGHEST)
        edge = edge.astype(jnp.bfloat16).astype(jnp.float32)
        return jnp.matmul(a, edge, precision=lax.Precision.HIGHEST)

    def check(out, ref, rtol, atol, name):
        assert out.shape == ref.shape, f"shape mismatch ({name})"
        assert bool(jnp.allclose(out, ref, rtol=rtol, atol=atol)), \
            f"mismatch vs reference ({name})"

    # Case 1: aligned sizes, default bf16 fast path (fused kernel).
    N, E, D = 256, 128, 128
    adj = jax.random.normal(k1, (N, E), dtype=jnp.float32)
    emb = jax.random.normal(k2, (N, D), dtype=jnp.float32)
    out = jax.block_until_ready(hgnn_layer(adj, emb, leaky=0.5))
    check(out, ref_bf16(adj, emb), 1e-2, 1.0, "fused bf16, aligned")

    # Case 2: exact-f32 mode (close to torch.mm numerics).
    out = jax.block_until_ready(hgnn_layer(adj, emb, leaky=0.5,
                                           bf16_inputs=False))
    check(out, ref_f32(adj, emb), 1e-3, 1e-3, "fused f32, aligned")

    # Case 3: unaligned sizes exercise the zero-padding path.
    N2, E2, D2 = 200, 48, 96
    adj2 = jax.random.normal(k3, (N2, E2), dtype=jnp.float32)
    emb2 = jax.random.normal(k4, (N2, D2), dtype=jnp.float32)
    out2 = jax.block_until_ready(hgnn_layer(adj2, emb2, leaky=0.5))
    check(out2, ref_bf16(adj2, emb2), 1e-2, 1.0, "fused bf16, padded")

    # Case 4: D >= 256 with a forced 2-way D split (megacore-style grid axis).
    N3, E3, D3 = 256, 128, 256
    adj3 = jax.random.normal(k5, (N3, E3), dtype=jnp.float32)
    emb3 = jax.random.normal(k6, (N3, D3), dtype=jnp.float32)
    out3 = jax.block_until_ready(hgnn_layer(adj3, emb3, leaky=0.5, _force_nd=2))
    check(out3, ref_bf16(adj3, emb3), 1e-2, 1.0, "fused bf16, D-split")

    # Case 5: force the two-kernel fallback path (large E*D regime).
    out4 = jax.block_until_ready(hgnn_layer(adj, emb, leaky=0.5,
                                            _force_fallback=True))
    check(out4, ref_bf16(adj, emb), 1e-2, 1.0, "fallback bf16")

    print("KERNEL_OK")
</pallas_src>

<mosaic_0001>
module attributes {stable_mosaic.version = 11 : i64} {
  func.func @_fused_hgnn_kernel(%arg0: i32, %arg1: i32, %arg2: i32, %arg3: memref<256x128xbf16, #tpu.memory_space<vmem>>, %arg4: memref<256x128xbf16, #tpu.memory_space<vmem>>, %arg5: memref<256x128xf32, #tpu.memory_space<vmem>>, %arg6: memref<128x128xf32, #tpu.memory_space<vmem>>, %arg7: memref<128x128xbf16, #tpu.memory_space<vmem>>) attributes {dimension_semantics = [#tpu.dimension_semantics<parallel>, #tpu.dimension_semantics<arbitrary>, #tpu.dimension_semantics<arbitrary>], iteration_bounds = array<i64: 1, 2, 1>, scalar_prefetch = 0 : i64, scratch_operands = 2 : i64, tpu.core_type = #tpu.core_type<tc>, window_params = [{transform_indices = @transform_0, window_bounds = array<i64: 256, 128>}, {transform_indices = @transform_1, window_bounds = array<i64: 256, 128>}, {transform_indices = @transform_2, window_bounds = array<i64: 256, 128>}]} {
    %c0_i32 = arith.constant 0 : i32
    %0 = arith.cmpi eq, %arg1, %c0_i32 : i32
    %c0_i32_0 = arith.constant 0 : i32
    %1 = arith.cmpi eq, %arg2, %c0_i32_0 : i32
    %2 = arith.andi %0, %1 : i1
    %3 = arith.extui %2 : i1 to i32
    %c0_i32_1 = arith.constant 0 : i32
    %4 = arith.cmpi ne, %3, %c0_i32_1 : i32
    scf.if %4 {
      %c0 = arith.constant 0 : index
      %c0_9 = arith.constant 0 : index
      %18 = vector.load %arg3[%c0, %c0_9] : memref<256x128xbf16, #tpu.memory_space<vmem>>, vector<256x128xbf16>
      %c0_10 = arith.constant 0 : index
      %c0_11 = arith.constant 0 : index
      %19 = vector.load %arg4[%c0_10, %c0_11] : memref<256x128xbf16, #tpu.memory_space<vmem>>, vector<256x128xbf16>
      %cst = arith.constant dense<0.000000e+00> : vector<128x128xf32>
      %20 = tpu.matmul %18, %19, %cst {dimension_numbers = #tpu.dot_dimension_numbers<[0], [0], [1], [1], [0, 1, 1, 1], [], []>} : vector<256x128xbf16>, vector<256x128xbf16>, vector<128x128xf32> -> vector<128x128xf32>
      %c0_12 = arith.constant 0 : index
      %c0_13 = arith.constant 0 : index
      %21 = vector.load %arg6[%c0_12, %c0_13] : memref<128x128xf32, #tpu.memory_space<vmem>>, vector<128x128xf32>
      tpu.vector_store %arg6[%c0_12, %c0_13], %20 {strides = array<i32>} : memref<128x128xf32, #tpu.memory_space<vmem>>, vector<128x128xf32>,
    } else {
    }
    %c0_i32_2 = arith.constant 0 : i32
    %5 = arith.cmpi eq, %arg1, %c0_i32_2 : i32
    %c0_i32_3 = arith.constant 0 : i32
    %6 = arith.cmpi sgt, %arg2, %c0_i32_3 : i32
    %7 = arith.andi %5, %6 : i1
    %8 = arith.extui %7 : i1 to i32
    %c0_i32_4 = arith.constant 0 : i32
    %9 = arith.cmpi ne, %8, %c0_i32_4 : i32
    scf.if %9 {
      %c0 = arith.constant 0 : index
      %c0_9 = arith.constant 0 : index
      %18 = vector.load %arg6[%c0, %c0_9] : memref<128x128xf32, #tpu.memory_space<vmem>>, vector<128x128xf32>
      %c0_10 = arith.constant 0 : index
      %c0_11 = arith.constant 0 : index
      %19 = vector.load %arg3[%c0_10, %c0_11] : memref<256x128xbf16, #tpu.memory_space<vmem>>, vector<256x128xbf16>
      %c0_12 = arith.constant 0 : index
      %c0_13 = arith.constant 0 : index
      %20 = vector.load %arg4[%c0_12, %c0_13] : memref<256x128xbf16, #tpu.memory_space<vmem>>, vector<256x128xbf16>
      %cst = arith.constant dense<0.000000e+00> : vector<128x128xf32>
      %21 = tpu.matmul %19, %20, %cst {dimension_numbers = #tpu.dot_dimension_numbers<[0], [0], [1], [1], [0, 1, 1, 1], [], []>} : vector<256x128xbf16>, vector<256x128xbf16>, vector<128x128xf32> -> vector<128x128xf32>
      %22 = arith.addf %18, %21 : vector<128x128xf32>
      %c0_14 = arith.constant 0 : index
      %c0_15 = arith.constant 0 : index
      %23 = vector.load %arg6[%c0_14, %c0_15] : memref<128x128xf32, #tpu.memory_space<vmem>>, vector<128x128xf32>
      tpu.vector_store %arg6[%c0_14, %c0_15], %22 {strides = array<i32>} : memref<128x128xf32, #tpu.memory_space<vmem>>, vector<128x128xf32>,
    } else {
    }
    %c0_i32_5 = arith.constant 0 : i32
    %10 = arith.cmpi eq, %arg1, %c0_i32_5 : i32
    %c0_i32_6 = arith.constant 0 : i32
    %11 = arith.cmpi eq, %arg2, %c0_i32_6 : i32
    %12 = arith.andi %10, %11 : i1
    %13 = arith.extui %12 : i1 to i32
    %c0_i32_7 = arith.constant 0 : i32
    %14 = arith.cmpi ne, %13, %c0_i32_7 : i32
    scf.if %14 {
      %c0 = arith.constant 0 : index
      %c0_9 = arith.constant 0 : index
      %18 = vector.load %arg6[%c0, %c0_9] : memref<128x128xf32, #tpu.memory_space<vmem>>, vector<128x128xf32>
      %19 = arith.truncf %18 : vector<128x128xf32> to vector<128x128xbf16>
      %c0_10 = arith.constant 0 : index
      %c0_11 = arith.constant 0 : index
      %20 = vector.load %arg7[%c0_10, %c0_11] : memref<128x128xbf16, #tpu.memory_space<vmem>>, vector<128x128xbf16>
      tpu.vector_store %arg7[%c0_10, %c0_11], %19 {strides = array<i32>} : memref<128x128xbf16, #tpu.memory_space<vmem>>, vector<128x128xbf16>,
    } else {
    }
    %c1_i32 = arith.constant 1 : i32
    %15 = arith.cmpi eq, %arg1, %c1_i32 : i32
    %16 = arith.extui %15 : i1 to i32
    %c0_i32_8 = arith.constant 0 : i32
    %17 = arith.cmpi ne, %16, %c0_i32_8 : i32
    scf.if %17 {
      %c0 = arith.constant 0 : index
      %c0_9 = arith.constant 0 : index
      %18 = vector.load %arg3[%c0, %c0_9] : memref<256x128xbf16, #tpu.memory_space<vmem>>, vector<256x128xbf16>
      %c0_10 = arith.constant 0 : index
      %c0_11 = arith.constant 0 : index
      %19 = vector.load %arg7[%c0_10, %c0_11] : memref<128x128xbf16, #tpu.memory_space<vmem>>, vector<128x128xbf16>
      %cst = arith.constant dense<0.000000e+00> : vector<256x128xf32>
      %20 = tpu.matmul %18, %19, %cst {dimension_numbers = #tpu.dot_dimension_numbers<[1], [0], [0], [1], [0, 0, 1, 1], [], []>} : vector<256x128xbf16>, vector<128x128xbf16>, vector<256x128xf32> -> vector<256x128xf32>
      %c0_12 = arith.constant 0 : index
      %c0_13 = arith.constant 0 : index
      %21 = vector.load %arg5[%c0_12, %c0_13] : memref<256x128xf32, #tpu.memory_space<vmem>>, vector<256x128xf32>
      tpu.vector_store %arg5[%c0_12, %c0_13], %20 {strides = array<i32>} : memref<256x128xf32, #tpu.memory_space<vmem>>, vector<256x128xf32>,
    } else {
    }
    return
  }
  func.func @transform_0(%arg0: i32, %arg1: i32, %arg2: i32) -> (i32, i32) {
    %c0_i32 = arith.constant 0 : i32
    %c0_i32_0 = arith.constant 0 : i32
    return %arg2, %c0_i32 : i32, i32
  }
  func.func @transform_1(%arg0: i32, %arg1: i32, %arg2: i32) -> (i32, i32) {
    %c1_i32 = arith.constant 1 : i32
    %0 = arith.subi %c1_i32, %arg1 : i32
    %1 = arith.muli %arg2, %0 : i32
    %c0_i32 = arith.constant 0 : i32
    %2 = arith.muli %c0_i32, %arg1 : i32
    %3 = arith.addi %1, %2 : i32
    %c0_i32_0 = arith.constant 0 : i32
    return %3, %arg0 : i32, i32
  }
  func.func @transform_2(%arg0: i32, %arg1: i32, %arg2: i32) -> (i32, i32) {
    %0 = arith.muli %arg2, %arg1 : i32
    %c0_i32 = arith.constant 0 : i32
    return %0, %arg0 : i32, i32
  }
}

</mosaic_0001>

<bundles_post_ra>
// kernel: hgnn_layer.1
= control target key start
LH: loop header
LB: loop body
LE: loop exit
PB: predicated region body
PF: predicated region fallthrough
CT: control target
= control target key end

     0   :  { %7 = vsyncpa [#allocation5], 0  ;;  %s2166_s0 = inlined_call_operand.vmem [shape: bf16[256,128], index: 0, kind: input, shape index: {}]   ;;  %s2167_s1 = inlined_call_operand.vmem [shape: bf16[256,128], index: 1, kind: input, shape index: {}]   ;;  %s2168_s2 = inlined_call_operand.hbm [shape: f32[256,128], index: 2, kind: output, shape index: {}]  }
   0x1   :  { %9 = vsyncpa [#allocation5 + $0x1], 0  ;;  %s1958_s9 = smov 0   ;;  %s1960_s10 = smov 0  }
   0x2   :  { %s1962_s11 = smov 0  }
   0x3 LB: > { %s1538_s12 = sadd.s32 4294967295, %s1938_s11   ;;  %s1539_s13 = sadd.s32 4294967294, %s1938_s11   ;;  %s1938_s11 = sphi %s1962_s11, %s15_s11   ;;  %s1934_s10 = sphi %s1960_s10, %s2171_s10   ;;  %s1930_s9 = sphi %s1958_s9, %s2170_s9  }
   0x4   : > { %s30_s14 = sadd.s32 1, %s1934_s10  ;;  %p1544_p0 = scmp.ge.s32.totalorder %s1938_s11, 1 }
   0x5   : > { %p32_p1 = scmp.ge.s32.totalorder %s30_s14, 2  ;;  %p163_p2 = scmp.lt.s32.totalorder %s1938_s11, 3 }
   0x7   : > { %s2173_s14 = smov (%p32_p1, %s30_s14), 0  ;;  %p164_p3 = pnand %p1544_p0, %p163_p2 }
   0x8   : > { %p217_p4 = scmp.eq.s32.totalorder (!%p164_p3), %s1930_s9, 0 }
   0x9   : > { %167 = sbr.rel (%p164_p3) target bundleno = 689 (0x2b1), region = 28 }
  0x10   : > { %222 = sbr.rel (!%p217_p4) target bundleno = 379 (0x17b), region = 32  ;;  %v1838_v0 = vld [vmem:[%s2166_s0 + $0x40] sm:$0xff] (%p217_p4)   ;;  %v1840_v2 = vld [vmem:[%s2166_s0 + $0x48] sm:$0xff] (%p217_p4)   ;;  %v1842_v4 = vld [vmem:[%s2166_s0 + $0x50] sm:$0xff] (%p217_p4)  }
  0x11   : > { %v1839_v1 = vld [vmem:[%s2166_s0] sm:$0xff] (%p217_p4)   ;;  %399 = vxpose.xlu0.c.b16.start [1/8] (%p217_p4), %v1838_v0, 128  ;;  %v1841_v3 = vld [vmem:[%s2166_s0 + $0x8] sm:$0xff] (%p217_p4)   ;;  %v1843_v5 = vld [vmem:[%s2166_s0 + $0x10] sm:$0xff] (%p217_p4)  }
  0x12   : > { %383 = vxpose.xlu1.c.b16.start [1/8] (%p217_p4), %v1839_v1, 128  ;;  %v1844_v6 = vld [vmem:[%s2166_s0 + $0x58] sm:$0xff] (%p217_p4)   ;;  %v1846_v8 = vld [vmem:[%s2166_s0 + $0x60] sm:$0xff] (%p217_p4)   ;;  %v1848_v10 = vld [vmem:[%s2166_s0 + $0x68] sm:$0xff] (%p217_p4)  }
  0x13   : > { %v1845_v7 = vld [vmem:[%s2166_s0 + $0x18] sm:$0xff] (%p217_p4)   ;;  %v1847_v9 = vld [vmem:[%s2166_s0 + $0x20] sm:$0xff] (%p217_p4)   ;;  %v1849_v12 = vld [vmem:[%s2166_s0 + $0x28] sm:$0xff] (%p217_p4)  }
  0x14   : > { %v1854_v11 = vld [vmem:[%s2167_s1 + $0x40] sm:$0xff] (%p217_p4)   ;;  %v1856_v14 = vld [vmem:[%s2167_s1 + $0x48] sm:$0xff] (%p217_p4)   ;;  %v1858_v16 = vld [vmem:[%s2167_s1 + $0x50] sm:$0xff] (%p217_p4)  }
  0x15   : > { %400 = vxpose.xlu0.c.b16.cont [2/8] (%p217_p4), %v1840_v2, 128  ;;  %v1855_v13 = vld [vmem:[%s2167_s1] sm:$0xff] (%p217_p4)   ;;  %1632 = vmatprep.subr.bf16.mxu0 (%p217_p4), %v1854_v11  ;;  %v1857_v15 = vld [vmem:[%s2167_s1 + $0x8] sm:$0xff] (%p217_p4)   ;;  %v1850_v17 = vld [vmem:[%s2166_s0 + $0x70] sm:$0xff] (%p217_p4)  }
  0x16   : > { %384 = vxpose.xlu1.c.b16.cont [2/8] (%p217_p4), %v1841_v3, 128  ;;  %1633 = vmatpush3.bf16.msra.mxu0 (%p217_p4), %v1855_v13  ;;  %v1851_v18 = vld [vmem:[%s2166_s0 + $0x30] sm:$0xff] (%p217_p4)   ;;  %v1860_v20 = vld [vmem:[%s2167_s1 + $0x58] sm:$0xff] (%p217_p4)   ;;  %v1862_v24 = vld [vmem:[%s2167_s1 + $0x60] sm:$0xff] (%p217_p4)  }
  0x17   : > { %1634 = vmatprep.subr.bf16.mxu0 %v1856_v14  ;;  %1768 = vmatprep.subr.bf16.mxu1 %v1854_v11  ;;  %v1859_v19 = vld [vmem:[%s2167_s1 + $0x10] sm:$0xff]   ;;  %v1852_v21 = vld [vmem:[%s2166_s0 + $0x78] sm:$0xff]   ;;  %v1863_v25 = vld [vmem:[%s2167_s1 + $0x20] sm:$0xff]  }
  0x18   : > { %1776 = vmatpush3.bf16.msra.mxu1 %v1855_v13  ;;  %v1853_v22 = vld [vmem:[%s2166_s0 + $0x38] sm:$0xff]   ;;  %v1864_v26 = vld [vmem:[%s2167_s1 + $0x68] sm:$0xff]   ;;  %v1866_v28 = vld [vmem:[%s2167_s1 + $0x70] sm:$0xff]  }
  0x19   : > { %401 = vxpose.xlu0.c.b16.cont [3/8] %v1842_v4, 128  ;;  %1769 = vmatprep.subr.bf16.mxu1 %v1856_v14  ;;  %v1861_v23 = vld [vmem:[%s2167_s1 + $0x18] sm:$0xff]   ;;  %v1865_v27 = vld [vmem:[%s2167_s1 + $0x28] sm:$0xff]   ;;  %v1867_v29 = vld [vmem:[%s2167_s1 + $0x30] sm:$0xff]  }
  0x1a   : > { %385 = vxpose.xlu1.c.b16.cont [3/8] %v1843_v5, 128  ;;  %1635 = vmatpush3.bf16.msra.mxu0 %v1857_v15  ;;  %v1868_v30 = vld [vmem:[%s2167_s1 + $0x78] sm:$0xff]  }
  0x1b   : > { %1636 = vmatprep.subr.bf16.mxu0 %v1858_v16  ;;  %v1869_v31 = vld [vmem:[%s2167_s1 + $0x38] sm:$0xff]  }
  0x1c   : > { %1777 = vmatpush3.bf16.msra.mxu1 %v1857_v15 }
  0x1d   : > { %402 = vxpose.xlu0.c.b16.cont [4/8] %v1844_v6, 128  ;;  %1770 = vmatprep.subr.bf16.mxu1 %v1858_v16 }
  0x1e   : > { %386 = vxpose.xlu1.c.b16.cont [4/8] %v1845_v7, 128  ;;  %1637 = vmatpush3.bf16.msra.mxu0 %v1859_v19 }
  0x1f   : > { %1638 = vmatprep.subr.bf16.mxu0 %v1860_v20 }
  0x20   : > { %1778 = vmatpush3.bf16.msra.mxu1 %v1859_v19 }
  0x21   : > { %403 = vxpose.xlu0.c.b16.cont [5/8] %v1846_v8, 128  ;;  %1771 = vmatprep.subr.bf16.mxu1 %v1860_v20 }
  0x22   : > { %387 = vxpose.xlu1.c.b16.cont [5/8] %v1847_v9, 128  ;;  %1639 = vmatpush3.bf16.msra.mxu0 %v1861_v23 }
  0x23   : > { %1640 = vmatprep.subr.bf16.mxu0 %v1862_v24 }
  0x24   : > { %1779 = vmatpush3.bf16.msra.mxu1 %v1861_v23 }
  0x25   : > { %404 = vxpose.xlu0.c.b16.cont [6/8] %v1848_v10, 128  ;;  %1772 = vmatprep.subr.bf16.mxu1 %v1862_v24 }
  0x26   : > { %388 = vxpose.xlu1.c.b16.cont [6/8] %v1849_v12, 128  ;;  %1641 = vmatpush3.bf16.msra.mxu0 %v1863_v25 }
  0x27   : > { %1642 = vmatprep.subr.bf16.mxu0 %v1864_v26 }
  0x28   : > { %1780 = vmatpush3.bf16.msra.mxu1 %v1863_v25 }
  0x29   : > { %405 = vxpose.xlu0.c.b16.cont [7/8] %v1850_v17, 128  ;;  %1773 = vmatprep.subr.bf16.mxu1 %v1864_v26 }
  0x2a   : > { %389 = vxpose.xlu1.c.b16.cont [7/8] %v1851_v18, 128  ;;  %1643 = vmatpush3.bf16.msra.mxu0 %v1865_v27 }
  0x2b   : > { %1644 = vmatprep.subr.bf16.mxu0 %v1866_v28 }
  0x2c   : > { %1781 = vmatpush3.bf16.msra.mxu1 %v1865_v27 }
  0x2d   : > { %406 = vxpose.xlu0.c.b16.end [8/8] %v1852_v21, 128  ;;  %1774 = vmatprep.subr.bf16.mxu1 %v1866_v28 }
  0x2e   : > { %390 = vxpose.xlu1.c.b16.end [8/8] %v1853_v22, 128  ;;  %1645 = vmatpush3.bf16.msra.mxu0 %v1867_v29 }
  0x2f   : > { %1646 = vmatprep.subr.bf16.mxu0 %v1868_v30 }
  0x30   : > { %1782 = vmatpush3.bf16.msra.mxu1 %v1867_v29 }
  0x31   : > { %1775 = vmatprep.subr.bf16.mxu1 %v1868_v30 }
  0x32   : > { %1647 = vmatpush3.bf16.msra.mxu0 %v1869_v31 }
  0x34   : > { %1783 = vmatpush3.bf16.msra.mxu1 %v1869_v31 }
  0x77   : > { %v407_v32 = vpop.trf.xlu0 }
  0x78   : > { %543 = vmatprep.mubr.bf16.mxu0 %v407_v32  ;;  %v391_v33 = vpop.trf.xlu1 }
  0x79   : > { %544 = vmatmul.mubr.bf16.vlgmr.msra.gmra.mrb[0].mxu0 %v391_v33 }
  0x7b   : > { %v408_v34 = vpop.trf.xlu0 }
  0x7c   : > { %551 = vmatprep.mubr.bf16.mxu0 %v408_v34  ;;  %v392_v35 = vpop.trf.xlu1 }
  0x7f   : > { %v409_v36 = vpop.trf.xlu0 }
  0x80   : > { %v393_v37 = vpop.trf.xlu1 }
  0x81   : > { %552 = vmatmul.mubr.bf16.gmra.mrb[4].mxu0 %v392_v35 }
  0x82   : > { %559 = vmatprep.mubr.bf16.mxu0 %v409_v36 }
  0x83   : > { %v410_v38 = vpop.trf.xlu0 }
  0x84   : > { %v394_v39 = vpop.trf.xlu1 }
  0x87   : > { %v411_v40 = vpop.trf.xlu0 }
  0x88   : > { %575 = vmatprep.mubr.bf16.mxu1 %v411_v40  ;;  %v395_v41 = vpop.trf.xlu1 }
  0x89   : > { %560 = vmatmul.mubr.bf16.gmra.mrb[8].mxu0 %v393_v37  ;;  %576 = vmatmul.mubr.bf16.vlgmr.msra.gmra.mrb[0].mxu1 %v395_v41 }
  0x8a   : > { %567 = vmatprep.mubr.bf16.mxu0 %v410_v38 }
  0x8b   : > { %v412_v42 = vpop.trf.xlu0 }
  0x8c   : > { %583 = vmatprep.mubr.bf16.mxu1 %v412_v42  ;;  %v396_v43 = vpop.trf.xlu1 }
  0x8f   : > { %v413_v44 = vpop.trf.xlu0 }
  0x90   : > { %v397_v45 = vpop.trf.xlu1 }
  0x91   : > { %568 = vmatmul.mubr.bf16.gmra.mrb[12].mxu0 %v394_v39  ;;  %584 = vmatmul.mubr.bf16.gmra.mrb[4].mxu1 %v396_v43 }
  0x92   : > { %591 = vmatprep.mubr.bf16.mxu1 %v413_v44 }
  0x93   : > { %v414_v46 = vpop.trf.xlu0 }
  0x94   : > { %v398_v47 = vpop.trf.xlu1 }
  0x99   : > { %592 = vmatmul.mubr.bf16.gmra.mrb[8].mxu1 %v397_v45 }
  0x9a   : > { %599 = vmatprep.mubr.bf16.mxu1 %v414_v46 }
  0xa1   : > { %600 = vmatmul.mubr.bf16.gmra.mrb[12].mxu1 %v398_v47 }
 0x14c   : > { %v1648_v48 = vpop.f32.mrb[0].mxu0 }
 0x14d   : > { %v1649_v49 = vpop.f32.mrb[1].mxu0 }
 0x14e   : > { %v1650_v50 = vadd.f32 %v1649_v49, %v1648_v48  ;;  %v1651_v51 = vpop.f32.mrb[2].mxu0 }
 0x14f   : > { %v1652_v52 = vpop.f32.mrb[3].mxu0 }
 0x150   : > { %608 = vst [vmem:[#allocation2] sm:$0xff] %v1650_v50  ;;  %v1653_v53 = vadd.f32 %v1652_v52, %v1651_v51 }
 0x152   : > { %609 = vst [vmem:[#allocation2 + $0x8] sm:$0xff] %v1653_v53 }
 0x154   : > { %v1654_v54 = vpop.f32.mrb[4].mxu0 }
 0x155   : > { %v1655_v55 = vpop.f32.mrb[5].mxu0 }
 0x156   : > { %v1656_v56 = vadd.f32 %v1655_v55, %v1654_v54  ;;  %v1657_v57 = vpop.f32.mrb[6].mxu0 }
 0x157   : > { %v1658_v58 = vpop.f32.mrb[7].mxu0 }
 0x158   : > { %610 = vst [vmem:[#allocation2 + $0x10] sm:$0xff] %v1656_v56  ;;  %v1659_v59 = vadd.f32 %v1658_v58, %v1657_v57 }
 0x15a   : > { %611 = vst [vmem:[#allocation2 + $0x18] sm:$0xff] %v1659_v59 }
 0x15c   : > { %v1660_v60 = vpop.f32.mrb[8].mxu0  ;;  %v1672_v61 = vpop.f32.mrb[0].mxu1 }
 0x15d   : > { %v1661_v62 = vpop.f32.mrb[9].mxu0  ;;  %v1673_v63 = vpop.f32.mrb[1].mxu1 }
 0x15e   : > { %v1662_v0 = vadd.f32 %v1661_v62, %v1660_v60  ;;  %v1674_v1 = vadd.f32 %v1673_v63, %v1672_v61  ;;  %v1663_v2 = vpop.f32.mrb[10].mxu0  ;;  %v1675_v3 = vpop.f32.mrb[2].mxu1 }
 0x15f   : > { %v1664_v4 = vpop.f32.mrb[11].mxu0  ;;  %v1676_v5 = vpop.f32.mrb[3].mxu1 }
 0x160   : > { %612 = vst [vmem:[#allocation2 + $0x20] sm:$0xff] %v1662_v0  ;;  %616 = vst [vmem:[#allocation2 + $0x40] sm:$0xff] %v1674_v1  ;;  %v1665_v6 = vadd.f32 %v1664_v4, %v1663_v2  ;;  %v1677_v7 = vadd.f32 %v1676_v5, %v1675_v3 }
 0x162   : > { %613 = vst [vmem:[#allocation2 + $0x28] sm:$0xff] %v1665_v6  ;;  %617 = vst [vmem:[#allocation2 + $0x48] sm:$0xff] %v1677_v7 }
 0x164   : > { %v1666_v8 = vpop.f32.mrb[12].mxu0  ;;  %v1678_v9 = vpop.f32.mrb[4].mxu1 }
 0x165   : > { %v1667_v10 = vpop.f32.mrb[13].mxu0  ;;  %v1679_v11 = vpop.f32.mrb[5].mxu1 }
 0x166   : > { %v1668_v12 = vadd.f32 %v1667_v10, %v1666_v8  ;;  %v1680_v13 = vadd.f32 %v1679_v11, %v1678_v9  ;;  %v1669_v14 = vpop.f32.mrb[14].mxu0  ;;  %v1681_v15 = vpop.f32.mrb[6].mxu1 }
 0x167   : > { %v1670_v16 = vpop.f32.mrb[15].mxu0  ;;  %v1682_v17 = vpop.f32.mrb[7].mxu1 }
 0x168   : > { %614 = vst [vmem:[#allocation2 + $0x30] sm:$0xff] %v1668_v12  ;;  %618 = vst [vmem:[#allocation2 + $0x50] sm:$0xff] %v1680_v13  ;;  %v1671_v18 = vadd.f32 %v1670_v16, %v1669_v14  ;;  %v1683_v19 = vadd.f32 %v1682_v17, %v1681_v15 }
 0x16a   : > { %615 = vst [vmem:[#allocation2 + $0x38] sm:$0xff] %v1671_v18  ;;  %619 = vst [vmem:[#allocation2 + $0x58] sm:$0xff] %v1683_v19 }
 0x16c   : > { %v1684_v20 = vpop.f32.mrb[8].mxu1 }
 0x16d   : > { %v1685_v21 = vpop.f32.mrb[9].mxu1 }
 0x16e   : > { %v1686_v22 = vadd.f32 %v1685_v21, %v1684_v20  ;;  %v1687_v23 = vpop.f32.mrb[10].mxu1 }
 0x16f   : > { %v1688_v24 = vpop.f32.mrb[11].mxu1 }
 0x170   : > { %620 = vst [vmem:[#allocation2 + $0x60] sm:$0xff] %v1686_v22  ;;  %v1689_v25 = vadd.f32 %v1688_v24, %v1687_v23 }
 0x172   : > { %621 = vst [vmem:[#allocation2 + $0x68] sm:$0xff] %v1689_v25 }
 0x174   : > { %v1690_v26 = vpop.f32.mrb[12].mxu1 }
 0x175   : > { %v1691_v27 = vpop.f32.mrb[13].mxu1 }
 0x176   : > { %v1692_v28 = vadd.f32 %v1691_v27, %v1690_v26  ;;  %v1693_v29 = vpop.f32.mrb[14].mxu1 }
 0x177   : > { %v1694_v30 = vpop.f32.mrb[15].mxu1 }
 0x178   : > { %622 = vst [vmem:[#allocation2 + $0x70] sm:$0xff] %v1692_v28  ;;  %v1695_v31 = vadd.f32 %v1694_v30, %v1693_v29 }
 0x17a   : > { %623 = vst [vmem:[#allocation2 + $0x78] sm:$0xff] %v1695_v31 }
 0x17b PF: > { %1063 = sbr.rel (!%p217_p4) target bundleno = 389 (0x185), region = 40  ;;  %v1064_v32 = vld [vmem:[#allocation2] sm:$0xff] (%p217_p4)  ;;  %v1065_v33 = vld [vmem:[#allocation2 + $0x8] sm:$0xff] (%p217_p4)  ;;  %v1066_v34 = vld [vmem:[#allocation2 + $0x10] sm:$0xff] (%p217_p4) }
 0x17c   : > { %v1080_v35 = vpack.c.bf16 (%p217_p4), %v1065_v33, %v1064_v32  ;;  %v1067_v36 = vld [vmem:[#allocation2 + $0x18] sm:$0xff] (%p217_p4)  ;;  %v1068_v37 = vld [vmem:[#allocation2 + $0x20] sm:$0xff] (%p217_p4)  ;;  %v1069_v38 = vld [vmem:[#allocation2 + $0x28] sm:$0xff] (%p217_p4) }
 0x17d   : > { %v1081_v39 = vpack.c.bf16 (%p217_p4), %v1067_v36, %v1066_v34  ;;  %v1082_v40 = vpack.c.bf16 (%p217_p4), %v1069_v38, %v1068_v37  ;;  %v1070_v41 = vld [vmem:[#allocation2 + $0x30] sm:$0xff] (%p217_p4)  ;;  %v1071_v42 = vld [vmem:[#allocation2 + $0x38] sm:$0xff] (%p217_p4)  ;;  %v1072_v43 = vld [vmem:[#allocation2 + $0x40] sm:$0xff] (%p217_p4) }
 0x17e   : > { %1088 = vst [vmem:[#allocation3] sm:$0xff] (%p217_p4), %v1080_v35  ;;  %v1083_v44 = vpack.c.bf16 (%p217_p4), %v1071_v42, %v1070_v41  ;;  %v1073_v45 = vld [vmem:[#allocation2 + $0x48] sm:$0xff] (%p217_p4)  ;;  %v1074_v46 = vld [vmem:[#allocation2 + $0x50] sm:$0xff] (%p217_p4)  ;;  %v1075_v47 = vld [vmem:[#allocation2 + $0x58] sm:$0xff] (%p217_p4) }
 0x17f   : > { %1089 = vst [vmem:[#allocation3 + $0x8] sm:$0xff] (%p217_p4), %v1081_v39  ;;  %1090 = vst [vmem:[#allocation3 + $0x10] sm:$0xff] (%p217_p4), %v1082_v40  ;;  %v1084_v48 = vpack.c.bf16 (%p217_p4), %v1073_v45, %v1072_v43  ;;  %v1085_v49 = vpack.c.bf16 (%p217_p4), %v1075_v47, %v1074_v46  ;;  %v1076_v50 = vld [vmem:[#allocation2 + $0x60] sm:$0xff] (%p217_p4)  ;;  %v1077_v51 = vld [vmem:[#allocation2 + $0x68] sm:$0xff] (%p217_p4) }
 0x180   : > { %v1078_v52 = vld [vmem:[#allocation2 + $0x70] sm:$0xff] (%p217_p4)  ;;  %1091 = vst [vmem:[#allocation3 + $0x18] sm:$0xff] (%p217_p4), %v1083_v44  ;;  %v1086_v53 = vpack.c.bf16 (%p217_p4), %v1077_v51, %v1076_v50 }
 0x181   : > { %v1079_v54 = vld [vmem:[#allocation2 + $0x78] sm:$0xff] (%p217_p4)  ;;  %1092 = vst [vmem:[#allocation3 + $0x20] sm:$0xff] (%p217_p4), %v1084_v48  ;;  %1093 = vst [vmem:[#allocation3 + $0x28] sm:$0xff] (%p217_p4), %v1085_v49 }
 0x182   : > { %v1087_v55 = vpack.c.bf16 %v1079_v54, %v1078_v52  ;;  %1094 = vst [vmem:[#allocation3 + $0x30] sm:$0xff] %v1086_v53 }
 0x184   : > { %1095 = vst [vmem:[#allocation3 + $0x38] sm:$0xff] %v1087_v55 }
 0x185 PF: > { %p1610_p5 = scmp.ne.s32.totalorder %s1930_s9, 1 }
 0x186   : > { %v1870_v59 = vld [vmem:[%s2166_s0] sm:$0xff] (!%p1610_p5)   ;;  %v1872_v2 = vld [vmem:[%s2166_s0 + $0x8] sm:$0xff] (!%p1610_p5)   ;;  %v1874_v4 = vld [vmem:[%s2166_s0 + $0x10] sm:$0xff] (!%p1610_p5)  }
 0x187   : > { %1099 = sbr.rel (%p1610_p5) target bundleno = 665 (0x299), region = 44  ;;  %v1871_v60 = vld [vmem:[%s2166_s0 + $0x40] sm:$0xff] (!%p1610_p5)   ;;  %1736 = vmatprep.mubr.bf16.mxu0 (!%p1610_p5), %v1870_v59  ;;  %v1873_v3 = vld [vmem:[%s2166_s0 + $0x48] sm:$0xff] (!%p1610_p5)   ;;  %v1875_v5 = vld [vmem:[%s2166_s0 + $0x50] sm:$0xff] (!%p1610_p5)  }
 0x188   : > { %v1132_v56 = vld [vmem:[#allocation3] sm:$0xff] (!%p1610_p5)  ;;  %1752 = vmatprep.mubr.bf16.mxu1 (!%p1610_p5), %v1871_v60  ;;  %v1876_v6 = vld [vmem:[%s2166_s0 + $0x18] sm:$0xff] (!%p1610_p5)   ;;  %v1880_v10 = vld [vmem:[%s2166_s0 + $0x28] sm:$0xff] (!%p1610_p5)  }
 0x189   : > { %v1133_v57 = vld [vmem:[#allocation3 + $0x8] sm:$0xff] (!%p1610_p5)  ;;  %1720 = vmatprep.subr.bf16.mxu0 (!%p1610_p5), %v1132_v56  ;;  %1784 = vmatprep.subr.bf16.mxu1 (!%p1610_p5), %v1132_v56  ;;  %v1134_v58 = vld [vmem:[#allocation3 + $0x10] sm:$0xff] (!%p1610_p5)  ;;  %v1877_v7 = vld [vmem:[%s2166_s0 + $0x58] sm:$0xff] (!%p1610_p5)  }
 0x18a   : > { %1721 = vmatpush3.bf16.msra.mxu0 (!%p1610_p5), %v1132_v56  ;;  %1792 = vmatpush3.bf16.msra.mxu1 (!%p1610_p5), %v1132_v56  ;;  %v1135_v61 = vld [vmem:[#allocation3 + $0x18] sm:$0xff] (!%p1610_p5)  ;;  %v1878_v8 = vld [vmem:[%s2166_s0 + $0x20] sm:$0xff] (!%p1610_p5)   ;;  %v1881_v11 = vld [vmem:[%s2166_s0 + $0x68] sm:$0xff] (!%p1610_p5)  }
 0x18b   : > { %1722 = vmatprep.subr.bf16.mxu0 (!%p1610_p5), %v1133_v57  ;;  %1785 = vmatprep.subr.bf16.mxu1 (!%p1610_p5), %v1133_v57  ;;  %v1136_v62 = vld [vmem:[#allocation3 + $0x20] sm:$0xff] (!%p1610_p5)  ;;  %v1137_v63 = vld [vmem:[#allocation3 + $0x28] sm:$0xff] (!%p1610_p5)  ;;  %v1139_v1 = vld [vmem:[#allocation3 + $0x38] sm:$0xff] (!%p1610_p5) }
 0x18c   : > { %v1138_v0 = vld [vmem:[#allocation3 + $0x30] sm:$0xff] (!%p1610_p5)  ;;  %v1879_v9 = vld [vmem:[%s2166_s0 + $0x60] sm:$0xff] (!%p1610_p5)   ;;  %v1884_v14 = vld [vmem:[%s2166_s0 + $0x38] sm:$0xff] (!%p1610_p5)  }
 0x18d   : > { %v1882_v12 = vld [vmem:[%s2166_s0 + $0x30] sm:$0xff] (!%p1610_p5)   ;;  %v1885_v15 = vld [vmem:[%s2166_s0 + $0x78] sm:$0xff] (!%p1610_p5)  }
 0x18e   : > { %1723 = vmatpush3.bf16.msra.mxu0 %v1133_v57  ;;  %1793 = vmatpush3.bf16.msra.mxu1 %v1133_v57  ;;  %v1883_v13 = vld [vmem:[%s2166_s0 + $0x70] sm:$0xff]  }
 0x18f   : > { %1724 = vmatprep.subr.bf16.mxu0 %v1134_v58  ;;  %1786 = vmatprep.subr.bf16.mxu1 %v1134_v58 }
 0x192   : > { %1725 = vmatpush3.bf16.msra.mxu0 %v1134_v58  ;;  %1794 = vmatpush3.bf16.msra.mxu1 %v1134_v58 }
 0x193   : > { %1726 = vmatprep.subr.bf16.mxu0 %v1135_v61  ;;  %1787 = vmatprep.subr.bf16.mxu1 %v1135_v61 }
 0x196   : > { %1727 = vmatpush3.bf16.msra.mxu0 %v1135_v61  ;;  %1795 = vmatpush3.bf16.msra.mxu1 %v1135_v61 }
 0x197   : > { %1728 = vmatprep.subr.bf16.mxu0 %v1136_v62  ;;  %1788 = vmatprep.subr.bf16.mxu1 %v1136_v62 }
 0x19a   : > { %1729 = vmatpush3.bf16.msra.mxu0 %v1136_v62  ;;  %1796 = vmatpush3.bf16.msra.mxu1 %v1136_v62 }
 0x19b   : > { %1730 = vmatprep.subr.bf16.mxu0 %v1137_v63  ;;  %1789 = vmatprep.subr.bf16.mxu1 %v1137_v63 }
 0x19e   : > { %1731 = vmatpush3.bf16.msra.mxu0 %v1137_v63  ;;  %1797 = vmatpush3.bf16.msra.mxu1 %v1137_v63 }
 0x19f   : > { %1732 = vmatprep.subr.bf16.mxu0 %v1138_v0  ;;  %1790 = vmatprep.subr.bf16.mxu1 %v1138_v0 }
 0x1a2   : > { %1733 = vmatpush3.bf16.msra.mxu0 %v1138_v0  ;;  %1798 = vmatpush3.bf16.msra.mxu1 %v1138_v0 }
 0x1a3   : > { %1734 = vmatprep.subr.bf16.mxu0 %v1139_v1  ;;  %1791 = vmatprep.subr.bf16.mxu1 %v1139_v1 }
 0x1a6   : > { %1735 = vmatpush3.bf16.msra.mxu0 %v1139_v1  ;;  %1799 = vmatpush3.bf16.msra.mxu1 %v1139_v1 }
 0x1a9   : > { %1737 = vmatmul.mubr.bf16.vlgmr.msra.gmra.mrb[0].mxu0 %v1872_v2  ;;  %1753 = vmatmul.mubr.bf16.vlgmr.msra.gmra.mrb[0].mxu1 %v1873_v3 }
 0x1aa   : > { %1740 = vmatprep.mubr.bf16.mxu0 %v1874_v4  ;;  %1756 = vmatprep.mubr.bf16.mxu1 %v1875_v5 }
 0x1b1   : > { %1741 = vmatmul.mubr.bf16.gmra.mrb[4].mxu0 %v1876_v6  ;;  %1757 = vmatmul.mubr.bf16.gmra.mrb[4].mxu1 %v1877_v7 }
 0x1b2   : > { %1744 = vmatprep.mubr.bf16.mxu0 %v1878_v8  ;;  %1760 = vmatprep.mubr.bf16.mxu1 %v1879_v9 }
 0x1b9   : > { %1745 = vmatmul.mubr.bf16.gmra.mrb[8].mxu0 %v1880_v10  ;;  %1761 = vmatmul.mubr.bf16.gmra.mrb[8].mxu1 %v1881_v11 }
 0x1ba   : > { %1748 = vmatprep.mubr.bf16.mxu0 %v1882_v12  ;;  %1764 = vmatprep.mubr.bf16.mxu1 %v1883_v13 }
 0x1c1   : > { %1749 = vmatmul.mubr.bf16.gmra.mrb[12].mxu0 %v1884_v14  ;;  %1765 = vmatmul.mubr.bf16.gmra.mrb[12].mxu1 %v1885_v15 }
 0x27c   : > { %v1738_v16 = vpop.f32.mrb[0].mxu0  ;;  %v1754_v17 = vpop.f32.mrb[0].mxu1 }
 0x27d   : > { %1399 = vst [vmem:[#allocation4 + $0x10] sm:$0xff] %v1738_v16  ;;  %1415 = vst [vmem:[#allocation4 + $0x90] sm:$0xff] %v1754_v17  ;;  %v1270_v18 = vpop.f32.mrb[1].mxu0  ;;  %v1334_v19 = vpop.f32.mrb[1].mxu1 }
 0x27e   : > { %1397 = vst [vmem:[#allocation4] sm:$0xff] %v1270_v18  ;;  %1413 = vst [vmem:[#allocation4 + $0x80] sm:$0xff] %v1334_v19  ;;  %v1739_v20 = vpop.f32.mrb[2].mxu0  ;;  %v1755_v21 = vpop.f32.mrb[2].mxu1 }
 0x27f   : > { %1400 = vst [vmem:[#allocation4 + $0x18] sm:$0xff] %v1739_v20  ;;  %1416 = vst [vmem:[#allocation4 + $0x98] sm:$0xff] %v1755_v21  ;;  %v1273_v22 = vpop.f32.mrb[3].mxu0  ;;  %v1337_v23 = vpop.f32.mrb[3].mxu1 }
 0x280   : > { %1398 = vst [vmem:[#allocation4 + $0x8] sm:$0xff] %v1273_v22  ;;  %1414 = vst [vmem:[#allocation4 + $0x88] sm:$0xff] %v1337_v23 }
 0x284   : > { %v1742_v24 = vpop.f32.mrb[4].mxu0  ;;  %v1758_v25 = vpop.f32.mrb[4].mxu1 }
 0x285   : > { %1403 = vst [vmem:[#allocation4 + $0x30] sm:$0xff] %v1742_v24  ;;  %1419 = vst [vmem:[#allocation4 + $0xb0] sm:$0xff] %v1758_v25  ;;  %v1286_v26 = vpop.f32.mrb[5].mxu0  ;;  %v1350_v27 = vpop.f32.mrb[5].mxu1 }
 0x286   : > { %1401 = vst [vmem:[#allocation4 + $0x20] sm:$0xff] %v1286_v26  ;;  %1417 = vst [vmem:[#allocation4 + $0xa0] sm:$0xff] %v1350_v27  ;;  %v1743_v28 = vpop.f32.mrb[6].mxu0  ;;  %v1759_v29 = vpop.f32.mrb[6].mxu1 }
 0x287   : > { %1404 = vst [vmem:[#allocation4 + $0x38] sm:$0xff] %v1743_v28  ;;  %1420 = vst [vmem:[#allocation4 + $0xb8] sm:$0xff] %v1759_v29  ;;  %v1289_v30 = vpop.f32.mrb[7].mxu0  ;;  %v1353_v31 = vpop.f32.mrb[7].mxu1 }
 0x288   : > { %1402 = vst [vmem:[#allocation4 + $0x28] sm:$0xff] %v1289_v30  ;;  %1418 = vst [vmem:[#allocation4 + $0xa8] sm:$0xff] %v1353_v31 }
 0x28c   : > { %v1746_v32 = vpop.f32.mrb[8].mxu0  ;;  %v1762_v33 = vpop.f32.mrb[8].mxu1 }
 0x28d   : > { %1407 = vst [vmem:[#allocation4 + $0x50] sm:$0xff] %v1746_v32  ;;  %1423 = vst [vmem:[#allocation4 + $0xd0] sm:$0xff] %v1762_v33  ;;  %v1302_v34 = vpop.f32.mrb[9].mxu0  ;;  %v1366_v35 = vpop.f32.mrb[9].mxu1 }
 0x28e   : > { %1405 = vst [vmem:[#allocation4 + $0x40] sm:$0xff] %v1302_v34  ;;  %1421 = vst [vmem:[#allocation4 + $0xc0] sm:$0xff] %v1366_v35  ;;  %v1747_v36 = vpop.f32.mrb[10].mxu0  ;;  %v1763_v37 = vpop.f32.mrb[10].mxu1 }
 0x28f   : > { %1408 = vst [vmem:[#allocation4 + $0x58] sm:$0xff] %v1747_v36  ;;  %1424 = vst [vmem:[#allocation4 + $0xd8] sm:$0xff] %v1763_v37  ;;  %v1305_v38 = vpop.f32.mrb[11].mxu0  ;;  %v1369_v39 = vpop.f32.mrb[11].mxu1 }
 0x290   : > { %1406 = vst [vmem:[#allocation4 + $0x48] sm:$0xff] %v1305_v38  ;;  %1422 = vst [vmem:[#allocation4 + $0xc8] sm:$0xff] %v1369_v39 }
 0x294   : > { %v1750_v40 = vpop.f32.mrb[12].mxu0  ;;  %v1766_v41 = vpop.f32.mrb[12].mxu1 }
 0x295   : > { %1411 = vst [vmem:[#allocation4 + $0x70] sm:$0xff] %v1750_v40  ;;  %1427 = vst [vmem:[#allocation4 + $0xf0] sm:$0xff] %v1766_v41  ;;  %v1318_v42 = vpop.f32.mrb[13].mxu0  ;;  %v1382_v43 = vpop.f32.mrb[13].mxu1 }
 0x296   : > { %1409 = vst [vmem:[#allocation4 + $0x60] sm:$0xff] %v1318_v42  ;;  %1425 = vst [vmem:[#allocation4 + $0xe0] sm:$0xff] %v1382_v43  ;;  %v1751_v44 = vpop.f32.mrb[14].mxu0  ;;  %v1767_v45 = vpop.f32.mrb[14].mxu1 }
 0x297   : > { %1412 = vst [vmem:[#allocation4 + $0x78] sm:$0xff] %v1751_v44  ;;  %1428 = vst [vmem:[#allocation4 + $0xf8] sm:$0xff] %v1767_v45  ;;  %v1321_v46 = vpop.f32.mrb[15].mxu0  ;;  %v1385_v47 = vpop.f32.mrb[15].mxu1 }
 0x298   : > { %1410 = vst [vmem:[#allocation4 + $0x68] sm:$0xff] %v1321_v46  ;;  %1426 = vst [vmem:[#allocation4 + $0xe8] sm:$0xff] %v1385_v47 }
 0x299 PF: > { %p2132_p6 = scmp.eq.s32.totalorder %s1538_s12, 1  ;;  %s1940_s22 = smov [#allocation4]  }
 0x29a   : > { %s1445_s23 = sshll.u32 %s1940_s22, 4  ;;  %s1446_s23 = int_to_ptr.vmem [resolvable:$true] %s1445_s23 }
 0x29b   : > { %s1886_s24 = scalar_lea.vmem %s1446_s23, 4096  ;;  %s1892_s25 = scalar_lea.vmem %s1446_s23, 8192 }
 0x29c   : > { %p1887_p7 = scmp.ne.s32.totalorder %s1446_s23, %s1886_s24  ;;  %p1893_p10 = scmp.lt.s32.totalorder %s1446_s23, %s1446_s23 }
 0x29d   : > { %p1894_p11 = scmp.lt.s32.totalorder %s1892_s25, %s1886_s24 }
 0x29e   : > { %p1888_p8 = pnand %p1887_p7, %p2132_p6 }
 0x29f   : > { %p1895_p12 = por %p1894_p11, %p1893_p10 }
 0x2a0   : > { %p1889_p9 = pneg %p1888_p8 }
 0x2a2   : > { %p1896_p13 = pnand %p1895_p12, %p1889_p9 }
 0x2a4   : > { %1899 = shalt.err (!%p1896_p13)
}
 0x2a5   : > { %s1900_s27 = scalar_lea.hbm %s2168_s2, 4096 }
 0x2a6   : > { %p1901_p0 = scmp.ne.s32.totalorder %s2168_s2, %s1900_s27  ;;  %p1906_p3 = scmp.lt.u32.totalorder %s1900_s27, %s2168_s2 }
 0x2a8   : > { %p1902_p1 = pnand %p1901_p0, %p2132_p6 }
 0x2aa   : > { %p1903_p2 = pneg %p1902_p1 }
 0x2ac   : > { %p1908_p4 = pnand %p1906_p3, %p1903_p2 }
 0x2ae   : > { %1911 = shalt.err (!%p1908_p4)
}
 0x2af   : > { %s1941_s4 = smov 128   ;;  %s1942_s5 = smov 8  }
 0x2b0   : > { %1801 = dma.vmem_to_hbm [thread:$0]  (%p2132_p6), %s1446_s23, 4096, %s2168_s2, [#allocation5], %s1941_s4, %s1941_s4, %s1942_s5  }
 0x2b1 PF: > { %p1809_p5 = scmp.ge.s32.totalorder %s1938_s11, 2  ;;  %p1810_p7 = scmp.eq.s32.totalorder %s1539_s13, 1 }
 0x2b3   : > { %p1805_p8 = pnand %p1810_p7, %p1809_p5 }
 0x2b5   : > { %1925 = dma.done.wait (!%p1805_p8), [#allocation5], 4096  }
 0x2b6   : > { %1927 = vsyncadd (!%p1805_p8), [#allocation5], 4294963200  ;;  %s15_s11 = sadd.s32 1, %s1938_s11   ;;  %s2170_s9 = smov %s1934_s10 }
 0x2b7   : > { %p12_p9 = scmp.ge.s32.totalorder %s15_s11, 4   ;;  %s2171_s10 = smov %s2173_s14 }
 0x2b9   :  { %14 = sbr.rel (!%p12_p9) target bundleno = 3 (0x3), region = 82 }
 0x2c0   :  { %1466 = vsyncpa [#allocation5], 1 }
 0x2c1   :  { %1468 = vsyncpa [#allocation5 + $0x1], 1 }

</bundles_post_ra>
